<compile_context>
chip_gen: v7x
topology: tpu7x:2x2x1
jax: 0.10.0
libtpu: 0.0.40
codegen_flags: <defaults>
</compile_context>

<pallas_src>
import functools

import jax
import jax.numpy as jnp
from jax.experimental import pallas as pl
from jax.experimental.pallas import tpu as pltpu


def _round_up(x: int, m: int) -> int:
    return ((x + m - 1) // m) * m


def _cdiv(a: int, b: int) -> int:
    return -(-a // b)


def _pad_dim(d: int) -> int:
    # 256-wide MXU on v6e/v7x: pad to 256 when the real dim justifies it,
    # otherwise lane width 128 (which is also v5e's MXU width).
    return _round_up(d, 256) if d >= 192 else _round_up(d, 128)


def _sigmoid(z):
    # exp + approx reciprocal both run on the EUP slot, keeping VALU free.
    return pl.reciprocal(1.0 + jnp.exp(-z), approx=True)


def decoder_kernel(x_ref, w1_ref, b1_ref, w2_ref, b2_ref, o_ref):
    # flinear + sigmoid: (TB, E_in) @ (E_in, E_hid); bf16 operands, f32 acc.
    x = x_ref[...].astype(w1_ref.dtype)
    h = jnp.dot(x, w1_ref[...], preferred_element_type=jnp.float32)
    h = _sigmoid(h + b1_ref[...])
    # slinear + sigmoid: (TB, E_hid) @ (E_hid, D); bf16 operands, f32 acc.
    y = jnp.dot(h.astype(w2_ref.dtype), w2_ref[...],
                preferred_element_type=jnp.float32)
    o_ref[...] = _sigmoid(y + b2_ref[...]).astype(o_ref.dtype)


def prepare_decoder_params(w1, b1, w2, b2, *, mxu_dtype=jnp.bfloat16):
    """Pad + cast weights ONCE (hoisted out of the per-call forward path).

    w1: [E_in, E_hid] (pre-transposed, x @ w1), b1: [1, E_hid] or [E_hid]
    w2: [E_hid, D],                              b2: [1, D]   or [D]
    Returns bf16 padded weights and f32 padded biases.
    """
    E_in, E_hid = w1.shape
    D = w2.shape[1]
    E_in_p, E_hid_p, D_p = _pad_dim(E_in), _pad_dim(E_hid), _pad_dim(D)

    w1_p = jnp.pad(w1, ((0, E_in_p - E_in), (0, E_hid_p - E_hid))).astype(mxu_dtype)
    w2_p = jnp.pad(w2, ((0, E_hid_p - E_hid), (0, D_p - D))).astype(mxu_dtype)
    b1_p = jnp.pad(jnp.reshape(b1, (1, -1)).astype(jnp.float32),
                   ((0, 0), (0, E_hid_p - E_hid)))
    b2_p = jnp.pad(jnp.reshape(b2, (1, -1)).astype(jnp.float32),
                   ((0, 0), (0, D_p - D)))
    return w1_p, b1_p, w2_p, b2_p


def _vmem_capacity_bytes() -> int:
    try:
        return int(pltpu.get_tpu_info().vmem_capacity_bytes)
    except Exception:
        return 64 << 20  # conservative: v7x per-TensorCore VMEM


def _vmem_footprint(tb, e_in_p, e_hid_p, d_p, x_bytes, out_bytes, w_bytes):
    return (2 * tb * e_in_p * x_bytes            # x tile, double-buffered
            + 2 * tb * d_p * out_bytes           # out tile, double-buffered
            + (e_in_p * e_hid_p + e_hid_p * d_p) * w_bytes  # weights, Buffered(1)
            + (e_hid_p + d_p) * 4)               # f32 biases, Buffered(1)


def _choose_tb(batch: int, block_batch: int) -> int:
    num_tiles = max(1, _cdiv(batch, block_batch))
    if num_tiles == 1 and batch >= 16:
        num_tiles = 2  # v7x has 2 TensorCores; harmless on v5e/v6e
    return _round_up(_cdiv(batch, num_tiles), 8)


@functools.partial(jax.jit, static_argnames=("embed_size", "block_batch"))
def decoder_forward(x, w1_p, b1_p, w2_p, b2_p, *, embed_size, block_batch=512):
    """x: [B, E_in] (f32); padded/cast params from prepare_decoder_params."""
    B, E_in = x.shape
    E_in_p, E_hid_p = w1_p.shape
    D_p = w2_p.shape[1]
    D = embed_size

    x_bytes = jnp.dtype(x.dtype).itemsize
    out_bytes = x_bytes
    w_bytes = jnp.dtype(w1_p.dtype).itemsize

    cap = _vmem_capacity_bytes()
    TB = _choose_tb(B, block_batch)
    # Shrink the batch tile if the footprint would overflow ~80% of VMEM.
    while TB > 8 and _vmem_footprint(TB, E_in_p, E_hid_p, D_p,
                                     x_bytes, out_bytes, w_bytes) > int(0.80 * cap):
        TB = max(8, _round_up(TB // 2, 8))
    # TODO(synk): add a K-tiled fallback (Buffered weight tiles + f32
    # accumulator scratch with pl.when init/finalize) when the resident
    # weights alone approach the per-core VMEM capacity (notably v7x 64 MiB).

    B_p = _round_up(B, TB)
    x_p = jnp.pad(x, ((0, B_p - B), (0, E_in_p - E_in)))

    grid = (B_p // TB,)

    footprint = _vmem_footprint(TB, E_in_p, E_hid_p, D_p,
                                x_bytes, out_bytes, w_bytes)
    vmem_limit = max(16 << 20, min(int(0.90 * cap), footprint + (8 << 20)))

    cost = pl.CostEstimate(
        flops=2 * B_p * E_in_p * E_hid_p + 2 * B_p * E_hid_p * D_p,
        transcendentals=2 * B_p * (E_hid_p + D_p),  # exp + reciprocal
        bytes_accessed=(B_p * E_in_p * x_bytes
                        + (E_in_p * E_hid_p + E_hid_p * D_p) * w_bytes
                        + (E_hid_p + D_p) * 4
                        + B_p * D_p * out_bytes),
    )

    out_p = pl.pallas_call(
        decoder_kernel,
        out_shape=jax.ShapeDtypeStruct((B_p, D_p), x.dtype),
        grid=grid,
        in_specs=[
            pl.BlockSpec((TB, E_in_p), lambda i: (i, 0)),      # x tile (pipelined)
            pl.BlockSpec((E_in_p, E_hid_p), lambda i: (0, 0),
                         pipeline_mode=pl.Buffered(1)),         # w1 resident
            pl.BlockSpec((1, E_hid_p), lambda i: (0, 0),
                         pipeline_mode=pl.Buffered(1)),         # b1 resident
            pl.BlockSpec((E_hid_p, D_p), lambda i: (0, 0),
                         pipeline_mode=pl.Buffered(1)),         # w2 resident
            pl.BlockSpec((1, D_p), lambda i: (0, 0),
                         pipeline_mode=pl.Buffered(1)),         # b2 resident
        ],
        out_specs=pl.BlockSpec((TB, D_p), lambda i: (i, 0)),
        compiler_params=pltpu.CompilerParams(
            dimension_semantics=("parallel",),
            vmem_limit_bytes=vmem_limit,
        ),
        cost_estimate=cost,
    )(x_p, w1_p, b1_p, w2_p, b2_p)

    return out_p[:B, :D]


def init_decoder_params(key, embed_size, encoding_size, dtype=jnp.float32):
    """Deterministic init mimicking nn.Linear's U(-1/sqrt(fan_in), 1/sqrt(fan_in)).

    Weights stored pre-transposed as [in_features, out_features]."""
    k1, k2, k3, k4 = jax.random.split(key, 4)
    bound = 1.0 / (encoding_size ** 0.5)
    w1 = jax.random.uniform(k1, (encoding_size, encoding_size), dtype, -bound, bound)
    b1 = jax.random.uniform(k2, (1, encoding_size), dtype, -bound, bound)
    w2 = jax.random.uniform(k3, (encoding_size, embed_size), dtype, -bound, bound)
    b2 = jax.random.uniform(k4, (1, embed_size), dtype, -bound, bound)
    return w1, b1, w2, b2


def decoder_reference(x, w1, b1, w2, b2):
    h = jax.nn.sigmoid(x @ w1 + b1)
    return jax.nn.sigmoid(h @ w2 + b2)


if __name__ == "__main__":
    embed_size = 64      # output dim of slinear
    encoding_size = 32   # input dim / hidden dim
    batch = 8

    key = jax.random.PRNGKey(0)
    kx, kp = jax.random.split(key)
    x = jax.random.normal(kx, (batch, encoding_size), jnp.float32)
    w1, b1, w2, b2 = init_decoder_params(kp, embed_size, encoding_size)

    # Pad + cast weights once (hoisted out of the forward path).
    params = prepare_decoder_params(w1, b1, w2, b2)

    out = decoder_forward(x, *params, embed_size=embed_size)
    out = jax.block_until_ready(out)

    ref = decoder_reference(x, w1, b1, w2, b2)
    assert out.shape == (batch, embed_size), out.shape
    # bf16 MXU operands + approx reciprocal -> looser tolerance than f32.
    assert jnp.allclose(out, ref, atol=2e-2, rtol=2e-2), "mismatch vs reference"

    print("KERNEL_OK")
</pallas_src>

<mosaic_0001>
module attributes {stable_mosaic.version = 11 : i64} {
  func.func @decoder_kernel(%arg0: i32, %arg1: memref<8x128xf32, #tpu.memory_space<vmem>>, %arg2: memref<128x128xbf16, #tpu.memory_space<vmem>>, %arg3: memref<1x128xf32, #tpu.memory_space<vmem>>, %arg4: memref<128x128xbf16, #tpu.memory_space<vmem>>, %arg5: memref<1x128xf32, #tpu.memory_space<vmem>>, %arg6: memref<8x128xf32, #tpu.memory_space<vmem>>) attributes {dimension_semantics = [#tpu.dimension_semantics<parallel>], iteration_bounds = array<i64: 1>, scalar_prefetch = 0 : i64, scratch_operands = 0 : i64, tpu.core_type = #tpu.core_type<tc>, window_params = [{transform_indices = @transform_0, window_bounds = array<i64: 8, 128>}, {pipeline_mode = #tpu.pipeline_mode<synchronous>, transform_indices = @transform_1, window_bounds = array<i64: 128, 128>}, {pipeline_mode = #tpu.pipeline_mode<synchronous>, transform_indices = @transform_2, window_bounds = array<i64: 1, 128>}, {pipeline_mode = #tpu.pipeline_mode<synchronous>, transform_indices = @transform_3, window_bounds = array<i64: 128, 128>}, {pipeline_mode = #tpu.pipeline_mode<synchronous>, transform_indices = @transform_4, window_bounds = array<i64: 1, 128>}, {transform_indices = @transform_5, window_bounds = array<i64: 8, 128>}]} {
    %c0 = arith.constant 0 : index
    %c0_0 = arith.constant 0 : index
    %0 = vector.load %arg1[%c0, %c0_0] : memref<8x128xf32, #tpu.memory_space<vmem>>, vector<8x128xf32>
    %1 = arith.truncf %0 : vector<8x128xf32> to vector<8x128xbf16>
    %c0_1 = arith.constant 0 : index
    %c0_2 = arith.constant 0 : index
    %2 = vector.load %arg2[%c0_1, %c0_2] : memref<128x128xbf16, #tpu.memory_space<vmem>>, vector<128x128xbf16>
    %cst = arith.constant dense<0.000000e+00> : vector<8x128xf32>
    %3 = tpu.matmul %1, %2, %cst {dimension_numbers = #tpu.dot_dimension_numbers<[1], [0], [0], [1], [0, 0, 1, 1], [], []>} : vector<8x128xbf16>, vector<128x128xbf16>, vector<8x128xf32> -> vector<8x128xf32>
    %c0_3 = arith.constant 0 : index
    %c0_4 = arith.constant 0 : index
    %4 = vector.load %arg3[%c0_3, %c0_4] : memref<1x128xf32, #tpu.memory_space<vmem>>, vector<1x128xf32>
    %5 = vector.broadcast %4 : vector<1x128xf32> to vector<8x128xf32>
    %6 = arith.addf %3, %5 : vector<8x128xf32>
    %cst_5 = arith.constant 0.000000e+00 : f32
    %7 = vector.broadcast %cst_5 : f32 to vector<8x128xf32>
    %8 = arith.subf %7, %6 : vector<8x128xf32>
    %9 = math.exp %8 : vector<8x128xf32>
    %cst_6 = arith.constant 1.000000e+00 : f32
    %10 = vector.broadcast %cst_6 : f32 to vector<8x128xf32>
    %11 = arith.addf %10, %9 : vector<8x128xf32>
    %12 = tpu.reciprocal %11 {approx = true} : vector<8x128xf32> -> vector<8x128xf32>
    %13 = arith.truncf %12 : vector<8x128xf32> to vector<8x128xbf16>
    %c0_7 = arith.constant 0 : index
    %c0_8 = arith.constant 0 : index
    %14 = vector.load %arg4[%c0_7, %c0_8] : memref<128x128xbf16, #tpu.memory_space<vmem>>, vector<128x128xbf16>
    %cst_9 = arith.constant dense<0.000000e+00> : vector<8x128xf32>
    %15 = tpu.matmul %13, %14, %cst_9 {dimension_numbers = #tpu.dot_dimension_numbers<[1], [0], [0], [1], [0, 0, 1, 1], [], []>} : vector<8x128xbf16>, vector<128x128xbf16>, vector<8x128xf32> -> vector<8x128xf32>
    %c0_10 = arith.constant 0 : index
    %c0_11 = arith.constant 0 : index
    %16 = vector.load %arg5[%c0_10, %c0_11] : memref<1x128xf32, #tpu.memory_space<vmem>>, vector<1x128xf32>
    %17 = vector.broadcast %16 : vector<1x128xf32> to vector<8x128xf32>
    %18 = arith.addf %15, %17 : vector<8x128xf32>
    %cst_12 = arith.constant 0.000000e+00 : f32
    %19 = vector.broadcast %cst_12 : f32 to vector<8x128xf32>
    %20 = arith.subf %19, %18 : vector<8x128xf32>
    %21 = math.exp %20 : vector<8x128xf32>
    %cst_13 = arith.constant 1.000000e+00 : f32
    %22 = vector.broadcast %cst_13 : f32 to vector<8x128xf32>
    %23 = arith.addf %22, %21 : vector<8x128xf32>
    %24 = tpu.reciprocal %23 {approx = true} : vector<8x128xf32> -> vector<8x128xf32>
    %c0_14 = arith.constant 0 : index
    %c0_15 = arith.constant 0 : index
    %25 = vector.load %arg6[%c0_14, %c0_15] : memref<8x128xf32, #tpu.memory_space<vmem>>, vector<8x128xf32>
    tpu.vector_store %arg6[%c0_14, %c0_15], %24 {strides = array<i32>} : memref<8x128xf32, #tpu.memory_space<vmem>>, vector<8x128xf32>,
    return
  }
  func.func @transform_0(%arg0: i32) -> (i32, i32) {
    %c0_i32 = arith.constant 0 : i32
    %c0_i32_0 = arith.constant 0 : i32
    return %arg0, %c0_i32 : i32, i32
  }
  func.func @transform_1(%arg0: i32) -> (i32, i32) {
    %c0_i32 = arith.constant 0 : i32
    %c0_i32_0 = arith.constant 0 : i32
    %c0_i32_1 = arith.constant 0 : i32
    return %c0_i32, %c0_i32_0 : i32, i32
  }
  func.func @transform_2(%arg0: i32) -> (i32, i32) {
    %c0_i32 = arith.constant 0 : i32
    %c0_i32_0 = arith.constant 0 : i32
    %c0_i32_1 = arith.constant 0 : i32
    return %c0_i32, %c0_i32_0 : i32, i32
  }
  func.func @transform_3(%arg0: i32) -> (i32, i32) {
    %c0_i32 = arith.constant 0 : i32
    %c0_i32_0 = arith.constant 0 : i32
    %c0_i32_1 = arith.constant 0 : i32
    return %c0_i32, %c0_i32_0 : i32, i32
  }
  func.func @transform_4(%arg0: i32) -> (i32, i32) {
    %c0_i32 = arith.constant 0 : i32
    %c0_i32_0 = arith.constant 0 : i32
    %c0_i32_1 = arith.constant 0 : i32
    return %c0_i32, %c0_i32_0 : i32, i32
  }
  func.func @transform_5(%arg0: i32) -> (i32, i32) {
    %c0_i32 = arith.constant 0 : i32
    %c0_i32_0 = arith.constant 0 : i32
    return %arg0, %c0_i32 : i32, i32
  }
}

</mosaic_0001>

<bundles_post_ra>
// kernel: decoder_forward.1
= control target key start
LH: loop header
LB: loop body
LE: loop exit
PB: predicated region body
PF: predicated region fallthrough
CT: control target
= control target key end

     0   :  { %10 = vsyncpa [#allocation3], 0  ;;  %s563_s0 = inlined_call_operand.vmem [shape: f32[8,128], index: 0, kind: input, shape index: {}]   ;;  %s564_s1 = inlined_call_operand.hbm [shape: bf16[128,128], index: 1, kind: input, shape index: {}]   ;;  %s565_s2 = inlined_call_operand.vmem [shape: f32[1,128], index: 2, kind: input, shape index: {}]   ;;  %s566_s3 = inlined_call_operand.hbm [shape: bf16[128,128], index: 3, kind: input, shape index: {}]   ;;  %s567_s4 = inlined_call_operand.vmem [shape: f32[1,128], index: 4, kind: input, shape index: {}]   ;;  %s568_s5 = inlined_call_operand.hbm [shape: f32[8,128], index: 5, kind: output, shape index: {}]  }
   0x1   :  { %11 = vsyncpa [#allocation6], 0 }
   0x2   :  { %12 = vsyncpa [#allocation4], 0  ;;  %s481_s18 = smov [#allocation2]   ;;  %s409_s22 = scalar_lea.hbm %s564_s1, 1024 }
   0x3   :  { %s20_s19 = sshll.u32 %s481_s18, 4  ;;  %p410_p0 = scmp.ne.s32.totalorder %s564_s1, %s409_s22  ;;  %s21_s19 = int_to_ptr.vmem [resolvable:$true] %s20_s19 }
   0x4   :  { %p413_p1 = scmp.lt.u32.totalorder %s409_s22, %s564_s1 }
   0x6   :  { %p415_p2 = pnand %p413_p1, %p410_p0 }
   0x8   :  { %418 = shalt.err (!%p415_p2)
}
   0x9   :  { %s419_s27 = scalar_lea.vmem %s21_s19, 1024  ;;  %p424_p4 = scmp.lt.s32.totalorder %s21_s19, %s21_s19 }
   0xa   :  { %p420_p3 = scmp.ne.s32.totalorder %s21_s19, %s419_s27  ;;  %p425_p5 = scmp.lt.s32.totalorder %s419_s27, %s419_s27 }
   0xc   :  { %p426_p6 = por %p425_p5, %p424_p4 }
   0xe   :  { %p427_p7 = pnand %p426_p6, %p420_p3 }
  0x10   :  { %430 = shalt.err (!%p427_p7)
}
  0x11   :  { %s482_s28 = smov 64   ;;  %s483_s29 = smov 4  }
  0x12   :  { %26 = dma.hbm_to_vmem [thread:$0]  %s564_s1, 1024, %s21_s19, [#allocation3], %s482_s28, %s482_s28, %s483_s29  }
  0x13   :  { %s484_s7 = smov [#allocation5]   ;;  %s431_s11 = scalar_lea.hbm %s566_s3, 1024 }
  0x14   :  { %s34_s8 = sshll.u32 %s484_s7, 4  ;;  %p432_p8 = scmp.ne.s32.totalorder %s566_s3, %s431_s11  ;;  %s35_s8 = int_to_ptr.vmem [resolvable:$true] %s34_s8 }
  0x15   :  { %p435_p9 = scmp.lt.u32.totalorder %s431_s11, %s566_s3 }
  0x17   :  { %p437_p10 = pnand %p435_p9, %p432_p8 }
  0x19   :  { %440 = shalt.err (!%p437_p10)
}
  0x1a   :  { %s441_s16 = scalar_lea.vmem %s35_s8, 1024  ;;  %p446_p12 = scmp.lt.s32.totalorder %s35_s8, %s35_s8 }
  0x1b   :  { %p442_p11 = scmp.ne.s32.totalorder %s35_s8, %s441_s16  ;;  %p447_p13 = scmp.lt.s32.totalorder %s441_s16, %s441_s16 }
  0x1d   :  { %p448_p0 = por %p447_p13, %p446_p12 }
  0x1f   :  { %p449_p1 = pnand %p448_p0, %p442_p11 }
  0x21   :  { %452 = shalt.err (!%p449_p1)
}
  0x22   :  { %40 = dma.hbm_to_vmem [thread:$0]  %s566_s3, 1024, %s35_s8, [#allocation6], %s482_s28, %s482_s28, %s483_s29  }
  0x23   :  { %475 = dma.done.wait [#allocation3], 1024  }
  0x24   :  { %476 = vsyncadd [#allocation3], 4294966272 }
  0x25   :  { %477 = dma.done.wait [#allocation6], 1024  }
  0x26   :  { %478 = vsyncadd [#allocation6], 4294966272  ;;  %v485_v0 = vmov 0.0   ;;  %vm486_vm0 = vmmov 0   ;;  %v385_v1 = vld [vmem:[#allocation2] sm:$0xff]   ;;  %v386_v2 = vld [vmem:[#allocation2 + $0x8] sm:$0xff]  }
  0x27   :  { %338 = vmatprep.subr.bf16.mxu0 %v485_v0  ;;  %354 = vmatprep.mubr.msk.bf16.mxu0 %vm486_vm0, %v485_v0  ;;  %v387_v3 = vld [vmem:[#allocation2 + $0x10] sm:$0xff]   ;;  %v388_v4 = vld [vmem:[#allocation2 + $0x18] sm:$0xff]   ;;  %v389_v5 = vld [vmem:[#allocation2 + $0x20] sm:$0xff]  }
  0x28   :  { %358 = vmatprep.subr.bf16.mxu1 %v485_v0  ;;  %374 = vmatprep.mubr.msk.bf16.mxu1 %vm486_vm0, %v485_v0  ;;  %v390_v6 = vld [vmem:[#allocation2 + $0x28] sm:$0xff]   ;;  %v391_v7 = vld [vmem:[#allocation2 + $0x30] sm:$0xff]   ;;  %v392_v8 = vld [vmem:[#allocation2 + $0x38] sm:$0xff]  }
  0x29   :  { %339 = vmatpush3.bf16.msra.mxu0 %v385_v1  ;;  %v50_v9 = vld [vmem:[%s563_s0] sm:$0xff]  ;;  %v393_v11 = vld [vmem:[#allocation5] sm:$0xff]   ;;  %v394_v12 = vld [vmem:[#allocation5 + $0x8] sm:$0xff]  }
  0x2a   :  { %340 = vmatprep.subr.bf16.mxu0 %v485_v0  ;;  %v51_v10 = vpack.c.bf16 %v50_v9, %v50_v9  ;;  %359 = vmatpush3.bf16.msra.mxu1 %v393_v11  ;;  %v395_v13 = vld [vmem:[#allocation5 + $0x10] sm:$0xff]   ;;  %v396_v14 = vld [vmem:[#allocation5 + $0x18] sm:$0xff]   ;;  %v397_v15 = vld [vmem:[#allocation5 + $0x20] sm:$0xff]  }
  0x2b   :  { %360 = vmatprep.subr.bf16.mxu1 %v485_v0  ;;  %v398_v16 = vld [vmem:[#allocation5 + $0x28] sm:$0xff]   ;;  %v399_v17 = vld [vmem:[#allocation5 + $0x30] sm:$0xff]   ;;  %v400_v18 = vld [vmem:[#allocation5 + $0x38] sm:$0xff]  }
  0x2c   :  { %v302_v19 = vld [vmem:[%s565_s2] ss:$0 sm:$0xff]  ;;  %s487_s2 = smov [#allocation7]  }
  0x2d   :  { %341 = vmatpush3.bf16.msra.mxu0 %v386_v2  ;;  %v311_v31 = vld [vmem:[%s567_s4] ss:$0 sm:$0xff]  ;;  %s292_s22 = sshll.u32 %s487_s2, 4  ;;  %s293_s22 = int_to_ptr.vmem [resolvable:$true] %s292_s22 }
  0x2e   :  { %342 = vmatprep.subr.bf16.mxu0 %v485_v0  ;;  %361 = vmatpush3.bf16.msra.mxu1 %v394_v12  ;;  %s453_s23 = scalar_lea.vmem %s293_s22, 128  ;;  %p458_p3 = scmp.lt.s32.totalorder %s293_s22, %s293_s22 }
  0x2f   :  { %362 = vmatprep.subr.bf16.mxu1 %v485_v0  ;;  %p454_p2 = scmp.ne.s32.totalorder %s293_s22, %s453_s23  ;;  %p459_p4 = scmp.lt.s32.totalorder %s453_s23, %s453_s23 }
  0x31   :  { %343 = vmatpush3.bf16.msra.mxu0 %v387_v3  ;;  %p460_p5 = por %p459_p4, %p458_p3 }
  0x32   :  { %344 = vmatprep.subr.bf16.mxu0 %v485_v0  ;;  %363 = vmatpush3.bf16.msra.mxu1 %v395_v13 }
  0x33   :  { %364 = vmatprep.subr.bf16.mxu1 %v485_v0  ;;  %p461_p6 = pnand %p460_p5, %p454_p2 }
  0x35   :  { %345 = vmatpush3.bf16.msra.mxu0 %v388_v4 }
  0x36   :  { %346 = vmatprep.subr.bf16.mxu0 %v485_v0  ;;  %365 = vmatpush3.bf16.msra.mxu1 %v396_v14 }
  0x37   :  { %366 = vmatprep.subr.bf16.mxu1 %v485_v0 }
  0x39   :  { %347 = vmatpush3.bf16.msra.mxu0 %v389_v5 }
  0x3a   :  { %348 = vmatprep.subr.bf16.mxu0 %v485_v0  ;;  %367 = vmatpush3.bf16.msra.mxu1 %v397_v15 }
  0x3b   :  { %368 = vmatprep.subr.bf16.mxu1 %v485_v0 }
  0x3d   :  { %349 = vmatpush3.bf16.msra.mxu0 %v390_v6 }
  0x3e   :  { %350 = vmatprep.subr.bf16.mxu0 %v485_v0  ;;  %369 = vmatpush3.bf16.msra.mxu1 %v398_v16 }
  0x3f   :  { %370 = vmatprep.subr.bf16.mxu1 %v485_v0 }
  0x41   :  { %351 = vmatpush3.bf16.msra.mxu0 %v391_v7 }
  0x42   :  { %352 = vmatprep.subr.bf16.mxu0 %v485_v0  ;;  %371 = vmatpush3.bf16.msra.mxu1 %v399_v17 }
  0x43   :  { %372 = vmatprep.subr.bf16.mxu1 %v485_v0 }
  0x45   :  { %353 = vmatpush3.bf16.msra.mxu0 %v392_v8 }
  0x46   :  { %373 = vmatpush3.bf16.msra.mxu1 %v400_v18 }
  0x48   :  { %355 = vmatmul.mubr.bf16.vlgmr.msra.gmra.mrb[0].mxu0 %v51_v10 }
 0x11b   :  { %v157_v20 = vpop.f32.mrb[0].mxu0 }
 0x11c   :  { %v158_v21 = vadd.f32 %v302_v19, %v157_v20  ;;  %v356_v22 = vpop.f32.mrb[1].mxu0 }
 0x11d   :  { %v160_v23 = vpop.f32.mrb[2].mxu0 }
 0x11e   :  { %v163_v24 = vsub.f32 0.0, %v158_v21  ;;  %v357_v25 = vpop.f32.mrb[3].mxu0 }
 0x120   :  { %v164_v26 = vmul.f32 1.442695, %v163_v24 }
 0x122   :  { %401 = vpow2.f32 %v164_v26 }
 0x12c   :  { %v402_v27 = vpop.eup %401 }
 0x12d   :  { %v166_v28 = vadd.f32 1.0, %v402_v27 }
 0x12f   :  { %403 = vrcp.f32 %v166_v28 }
 0x139   :  { %v404_v29 = vpop.eup %403 }
 0x13a   :  { %v168_v30 = vpack.c.bf16 %v404_v29, %v404_v29 }
 0x13c   :  { %375 = vmatmul.mubr.bf16.vlgmr.msra.gmra.mrb[0].mxu1 %v168_v30 }
 0x20f   :  { %v274_v32 = vpop.f32.mrb[0].mxu1 }
 0x210   :  { %v275_v33 = vadd.f32 %v311_v31, %v274_v32  ;;  %v376_v34 = vpop.f32.mrb[1].mxu1 }
 0x211   :  { %v277_v35 = vpop.f32.mrb[2].mxu1 }
 0x212   :  { %v280_v36 = vsub.f32 0.0, %v275_v33  ;;  %v377_v37 = vpop.f32.mrb[3].mxu1 }
 0x214   :  { %v281_v38 = vmul.f32 1.442695, %v280_v36 }
 0x216   :  { %405 = vpow2.f32 %v281_v38 }
 0x220   :  { %v406_v39 = vpop.eup %405 }
 0x221   :  { %v283_v40 = vadd.f32 1.0, %v406_v39 }
 0x223   :  { %407 = vrcp.f32 %v283_v40 }
 0x22d   :  { %v408_v41 = vpop.eup %407 }
 0x22e   :  { %285 = vst [vmem:[#allocation7] sm:$0xff] %v408_v41 }
 0x22f   :  { %464 = shalt.err (!%p461_p6)
}
 0x230   :  { %s465_s25 = scalar_lea.hbm %s568_s5, 128 }
 0x231   :  { %p466_p7 = scmp.ne.s32.totalorder %s568_s5, %s465_s25  ;;  %p469_p8 = scmp.lt.u32.totalorder %s465_s25, %s568_s5 }
 0x233   :  { %p471_p9 = pnand %p469_p8, %p466_p7 }
 0x235   :  { %474 = shalt.err (!%p471_p9)
}
 0x236   :  { %295 = dma.vmem_to_hbm [thread:$0]  %s293_s22, 128, %s568_s5, [#allocation4]  }
 0x237   :  { %479 = dma.done.wait [#allocation4], 128  }
 0x238   :  { %480 = vsyncadd [#allocation4], 4294967168 }
 0x239   :  { %299 = vsyncpa [#allocation3], 1 }
 0x23a   :  { %300 = vsyncpa [#allocation6], 1 }
 0x23b   :  { %301 = vsyncpa [#allocation4], 1 }

</bundles_post_ra>
